<compile_context>
chip_gen: v5e
topology: v5e:2x2
jax: 0.10.0
libtpu: 0.0.40
codegen_flags: <defaults>
</compile_context>

<pallas_src>
import functools

import jax
import jax.numpy as jnp
from jax.experimental import pallas as pl
from jax.experimental.pallas import tpu as pltpu

_LANES = 128                    # lane width; rows are contiguous in HBM either way,
                                # and 128 maximizes the chance shapes divide evenly
_SUBLANES = 8
_STEP_BYTES = 6 * 1024 * 1024   # per-pipeline-step byte budget (all 3 inputs together)
_STEP_ELEMS_CAP = 768 * 1024    # caps f32 temporaries when inputs are low precision
_VMEM_LIMIT = 48 * 1024 * 1024  # > default scoped limit everywhere, headroom on v7x


def _num_tensorcores():
    """Best-effort TensorCore count: 2 on v7x / megacore chips, 1 on v5e/v6e."""
    try:
        kind = jax.devices()[0].device_kind.lower()
    except Exception:
        return 1
    if "v7" in kind or "7x" in kind or "v4" in kind or "v5p" in kind:
        return 2
    return 1


def _masked_l2_kernel(x_ref, t_ref, m_ref, out_ref, num_acc, den_acc, *,
                      rows, need_mask):
    """Per-core partial sums of ((x - t) * m)^2 and m.

    Grid = (n_cores [parallel], n_inner [arbitrary]); row-blocks are interleaved
    across cores (block = i * n_cores + p).  Each core accumulates into an
    (8, 128) f32 VMEM vector accumulator (pure VPU adds, no per-step cross-lane
    reduce) and writes its (num, den) pair to SMEM once on its last step.
    Boundary blocks that extend past `rows` are masked with a select (never a
    multiply) so garbage NaN/Inf in the unfilled part of the block cannot leak.
    """
    p = pl.program_id(0)
    i = pl.program_id(1)

    @pl.when(i == 0)
    def _():
        num_acc[...] = jnp.zeros_like(num_acc)
        den_acc[...] = jnp.zeros_like(den_acc)

    tm, lanes = x_ref.shape

    # Cast after load (inputs may be bf16 / int masks); accumulate in f32.
    x = x_ref[...].astype(jnp.float32)
    t = t_ref[...].astype(jnp.float32)
    m = m_ref[...].astype(jnp.float32)

    d = (x - t) * m
    sq = d * d

    if need_mask:  # static: only emitted when some block is partial / duplicated
        start = (i * pl.num_programs(0) + p) * tm
        row_id = jax.lax.broadcasted_iota(jnp.int32, (tm, lanes), 0)
        valid = (row_id + start) < rows
        sq = jnp.where(valid, sq, 0.0)
        m = jnp.where(valid, m, 0.0)

    # (tm, lanes) -> (tm//8, 8, lanes): splitting the major axis is free, and
    # summing over it is elementwise vreg adds (VPU), hidden under the DMA.
    num_acc[...] += sq.reshape(-1, _SUBLANES, lanes).sum(axis=0)
    den_acc[...] += m.reshape(-1, _SUBLANES, lanes).sum(axis=0)

    @pl.when(i == pl.num_programs(1) - 1)
    def _():
        out_ref[0, 0] = jnp.sum(num_acc[...])
        out_ref[0, 1] = jnp.sum(den_acc[...])


def masked_l2_loss(inp, target, mask, *, step_bytes=_STEP_BYTES, n_cores=None):
    """Pallas implementation of MaskedL2Loss.forward (same-shape inputs)."""
    inp = jnp.asarray(inp)
    target = jnp.asarray(target)
    mask = jnp.asarray(mask)
    assert inp.shape == target.shape == mask.shape, "same-shape inputs expected"

    total = 1
    for s in inp.shape:
        total *= s
    assert total > 0, "empty input"

    if n_cores is None:
        n_cores = _num_tensorcores()

    lanes = _LANES
    pad = (-total) % lanes           # 0 for any size that's a multiple of 128
    rows = (total + pad) // lanes

    itemsize_sum = inp.dtype.itemsize + target.dtype.itemsize + mask.dtype.itemsize

    if rows < 4 * _SUBLANES:
        # Tiny input: one full-extent block; pad rows up to a multiple of 8 so
        # the in-kernel (…, 8, lanes) binning reshape is valid.
        extra = (-rows) % _SUBLANES
        pad += extra * lanes
        rows += extra
        tm = rows
    else:
        # Dtype-aware row tile from a per-step byte budget (bf16 gets ~2x rows),
        # capped by an element budget (bounds f32 temporaries) and by `rows`.
        tm = (step_bytes // (lanes * itemsize_sum)) // 32 * 32
        tm = min(tm, (_STEP_ELEMS_CAP // lanes) // 32 * 32)
        tm = max(32, min(tm, (rows // 32) * 32))

    n_blocks = -(-rows // tm)                    # real row-blocks in the array
    n_inner = -(-n_blocks // n_cores)
    # Static: does any (p, i) block extend past `rows` (partial or duplicated)?
    need_mask = (n_cores * n_inner * tm) != rows

    def prep(a):
        a = a.reshape(-1)                        # keep native dtype (no HBM upcast)
        if pad:
            # Only for sizes not a multiple of 128 (or tiny inputs): one copy,
            # padded with zeros (exact: 0 contributes 0 to both sums). Aligned
            # shapes go through as a pure bitcast reshape — zero extra traffic.
            a = jnp.pad(a, (0, pad))
        return a.reshape(rows, lanes)

    xf, tf, mf = prep(inp), prep(target), prep(mask)

    # Interleave row-blocks across cores; clamp duplicated trailing blocks (only
    # possible when n_blocks % n_cores != 0) so the DMA stays in bounds — their
    # contribution is masked to zero in-kernel.
    if n_cores * n_inner == n_blocks:
        in_map = lambda p_, i_: (i_ * n_cores + p_, 0)
    else:
        in_map = lambda p_, i_: (jnp.minimum(i_ * n_cores + p_, n_blocks - 1), 0)

    in_spec = pl.BlockSpec((tm, lanes), in_map)

    kernel = functools.partial(_masked_l2_kernel, rows=rows, need_mask=need_mask)

    bytes_accessed = (xf.size * xf.dtype.itemsize + tf.size * tf.dtype.itemsize
                      + mf.size * mf.dtype.itemsize + n_cores * 2 * 4)

    partials = pl.pallas_call(
        kernel,
        out_shape=jax.ShapeDtypeStruct((n_cores, 2), jnp.float32),
        grid_spec=pltpu.PrefetchScalarGridSpec(
            num_scalar_prefetch=0,
            grid=(n_cores, n_inner),
            in_specs=[in_spec, in_spec, in_spec],
            out_specs=pl.BlockSpec(
                (1, 2), lambda p_, i_: (p_, 0), memory_space=pltpu.SMEM
            ),
            scratch_shapes=[
                pltpu.VMEM((_SUBLANES, lanes), jnp.float32),  # numerator acc
                pltpu.VMEM((_SUBLANES, lanes), jnp.float32),  # denominator acc
            ],
        ),
        compiler_params=pltpu.CompilerParams(
            # On v7x, if plain "parallel" doesn't core-shard the leading axis,
            # switch it to pltpu.CORE_PARALLEL (kept "parallel" for portability).
            dimension_semantics=("parallel", "arbitrary"),
            vmem_limit_bytes=_VMEM_LIMIT,
        ),
        cost_estimate=pl.CostEstimate(
            flops=5 * rows * lanes,
            transcendentals=0,
            bytes_accessed=bytes_accessed,
        ),
    )(xf, tf, mf)

    num = jnp.sum(partials[:, 0])
    den = jnp.sum(partials[:, 1])
    # NOTE: an all-zero mask yields NaN/Inf, matching the PyTorch module.
    return num / den


def _ref_loss(inp, target, mask):
    x = inp.astype(jnp.float32)
    t = target.astype(jnp.float32)
    m = mask.astype(jnp.float32)
    return jnp.sum(((x - t) * m) ** 2.0) / jnp.sum(m)


if __name__ == "__main__":
    key = jax.random.PRNGKey(0)
    k1, k2, k3 = jax.random.split(key, 3)

    # 1) Main shape (N, C, H, W) — aligned: zero-copy bitcast path.
    shape = (2, 4, 16, 16)
    inp = jax.random.normal(k1, shape, dtype=jnp.float32)
    target = jax.random.normal(k2, shape, dtype=jnp.float32)
    mask = (jax.random.uniform(k3, shape) > 0.5).astype(jnp.float32)
    loss = jax.block_until_ready(masked_l2_loss(inp, target, mask))
    ref = _ref_loss(inp, target, mask)
    assert jnp.allclose(loss, ref, rtol=1e-5, atol=1e-5), (loss, ref)

    # 2) Ragged shape: exercises the (tiny) zero-padding path.
    shape2 = (1, 3, 7, 13)
    i2 = jax.random.normal(k1, shape2, dtype=jnp.float32)
    t2 = jax.random.normal(k2, shape2, dtype=jnp.float32)
    m2 = (jax.random.uniform(k3, shape2) > 0.5).astype(jnp.float32)
    loss2 = jax.block_until_ready(masked_l2_loss(i2, t2, m2))
    ref2 = _ref_loss(i2, t2, m2)
    assert jnp.allclose(loss2, ref2, rtol=1e-5, atol=1e-5), (loss2, ref2)

    # 3) bf16 inputs: no wrapper upcast, cast happens in-kernel after the load.
    ib = inp.astype(jnp.bfloat16)
    tb = target.astype(jnp.bfloat16)
    loss3 = jax.block_until_ready(masked_l2_loss(ib, tb, mask))
    ref3 = _ref_loss(ib, tb, mask)
    assert jnp.allclose(loss3, ref3, rtol=1e-4, atol=1e-4), (loss3, ref3)

    # 4) Multi-step grid with a partial (in-kernel masked) trailing block.
    shape4 = (2, 3, 40, 56)   # 13440 elems -> 105 rows of 128
    i4 = jax.random.normal(k1, shape4, dtype=jnp.float32)
    t4 = jax.random.normal(k2, shape4, dtype=jnp.float32)
    m4 = (jax.random.uniform(k3, shape4) > 0.5).astype(jnp.float32)
    loss4 = jax.block_until_ready(masked_l2_loss(i4, t4, m4, step_bytes=16 * 1024))
    ref4 = _ref_loss(i4, t4, m4)
    assert jnp.allclose(loss4, ref4, rtol=1e-5, atol=1e-5), (loss4, ref4)

    # 5) Larger aligned shape through the default (budgeted-tile) path.
    shape5 = (4, 8, 32, 64)
    i5 = jax.random.normal(k1, shape5, dtype=jnp.float32)
    t5 = jax.random.normal(k2, shape5, dtype=jnp.float32)
    m5 = (jax.random.uniform(k3, shape5) > 0.5).astype(jnp.float32)
    loss5 = jax.block_until_ready(masked_l2_loss(i5, t5, m5))
    ref5 = _ref_loss(i5, t5, m5)
    assert jnp.allclose(loss5, ref5, rtol=1e-5, atol=1e-5), (loss5, ref5)

    print("KERNEL_OK")
</pallas_src>

<mosaic_0001>
module attributes {stable_mosaic.version = 11 : i64} {
  func.func @_masked_l2_kernel(%arg0: i32, %arg1: i32, %arg2: memref<16x128xf32, #tpu.memory_space<vmem>>, %arg3: memref<16x128xf32, #tpu.memory_space<vmem>>, %arg4: memref<16x128xf32, #tpu.memory_space<vmem>>, %arg5: memref<1x2xf32, #tpu.memory_space<smem>>, %arg6: memref<8x128xf32, #tpu.memory_space<vmem>>, %arg7: memref<8x128xf32, #tpu.memory_space<vmem>>) attributes {dimension_semantics = [#tpu.dimension_semantics<parallel>, #tpu.dimension_semantics<arbitrary>], iteration_bounds = array<i64: 1, 1>, scalar_prefetch = 0 : i64, scratch_operands = 2 : i64, tpu.core_type = #tpu.core_type<tc>, window_params = [{transform_indices = @transform_0, window_bounds = array<i64: 16, 128>}, {transform_indices = @transform_1, window_bounds = array<i64: 16, 128>}, {transform_indices = @transform_2, window_bounds = array<i64: 16, 128>}, {transform_indices = @transform_3, window_bounds = array<i64: 1, 2>}]} {
    %c0_i32 = arith.constant 0 : i32
    %0 = arith.cmpi eq, %arg1, %c0_i32 : i32
    %1 = arith.extui %0 : i1 to i32
    %c0_i32_0 = arith.constant 0 : i32
    %2 = arith.cmpi ne, %1, %c0_i32_0 : i32
    scf.if %2 {
      %cst_17 = arith.constant 0.000000e+00 : f32
      %22 = vector.broadcast %cst_17 : f32 to vector<8x128xf32>
      %c0_18 = arith.constant 0 : index
      %c0_19 = arith.constant 0 : index
      %23 = vector.load %arg6[%c0_18, %c0_19] : memref<8x128xf32, #tpu.memory_space<vmem>>, vector<8x128xf32>
      tpu.vector_store %arg6[%c0_18, %c0_19], %22 {strides = array<i32>} : memref<8x128xf32, #tpu.memory_space<vmem>>, vector<8x128xf32>,
      %cst_20 = arith.constant 0.000000e+00 : f32
      %24 = vector.broadcast %cst_20 : f32 to vector<8x128xf32>
      %c0_21 = arith.constant 0 : index
      %c0_22 = arith.constant 0 : index
      %25 = vector.load %arg7[%c0_21, %c0_22] : memref<8x128xf32, #tpu.memory_space<vmem>>, vector<8x128xf32>
      tpu.vector_store %arg7[%c0_21, %c0_22], %24 {strides = array<i32>} : memref<8x128xf32, #tpu.memory_space<vmem>>, vector<8x128xf32>,
    } else {
    }
    %c0 = arith.constant 0 : index
    %c0_1 = arith.constant 0 : index
    %3 = vector.load %arg2[%c0, %c0_1] : memref<16x128xf32, #tpu.memory_space<vmem>>, vector<16x128xf32>
    %c0_2 = arith.constant 0 : index
    %c0_3 = arith.constant 0 : index
    %4 = vector.load %arg3[%c0_2, %c0_3] : memref<16x128xf32, #tpu.memory_space<vmem>>, vector<16x128xf32>
    %c0_4 = arith.constant 0 : index
    %c0_5 = arith.constant 0 : index
    %5 = vector.load %arg4[%c0_4, %c0_5] : memref<16x128xf32, #tpu.memory_space<vmem>>, vector<16x128xf32>
    %6 = arith.subf %3, %4 : vector<16x128xf32>
    %7 = arith.mulf %6, %5 : vector<16x128xf32>
    %8 = arith.mulf %7, %7 : vector<16x128xf32>
    %c0_6 = arith.constant 0 : index
    %c0_7 = arith.constant 0 : index
    %9 = vector.load %arg6[%c0_6, %c0_7] : memref<8x128xf32, #tpu.memory_space<vmem>>, vector<8x128xf32>
    %10 = vector.shape_cast %8 : vector<16x128xf32> to vector<2x8x128xf32>
    %cst = arith.constant dense<0.000000e+00> : vector<8x128xf32>
    %11 = vector.multi_reduction <add>, %10, %cst [0] : vector<2x8x128xf32> to vector<8x128xf32>
    %12 = arith.addf %9, %11 : vector<8x128xf32>
    %c0_8 = arith.constant 0 : index
    %c0_9 = arith.constant 0 : index
    %13 = vector.load %arg6[%c0_8, %c0_9] : memref<8x128xf32, #tpu.memory_space<vmem>>, vector<8x128xf32>
    tpu.vector_store %arg6[%c0_8, %c0_9], %12 {strides = array<i32>} : memref<8x128xf32, #tpu.memory_space<vmem>>, vector<8x128xf32>,
    %c0_10 = arith.constant 0 : index
    %c0_11 = arith.constant 0 : index
    %14 = vector.load %arg7[%c0_10, %c0_11] : memref<8x128xf32, #tpu.memory_space<vmem>>, vector<8x128xf32>
    %15 = vector.shape_cast %5 : vector<16x128xf32> to vector<2x8x128xf32>
    %cst_12 = arith.constant dense<0.000000e+00> : vector<8x128xf32>
    %16 = vector.multi_reduction <add>, %15, %cst_12 [0] : vector<2x8x128xf32> to vector<8x128xf32>
    %17 = arith.addf %14, %16 : vector<8x128xf32>
    %c0_13 = arith.constant 0 : index
    %c0_14 = arith.constant 0 : index
    %18 = vector.load %arg7[%c0_13, %c0_14] : memref<8x128xf32, #tpu.memory_space<vmem>>, vector<8x128xf32>
    tpu.vector_store %arg7[%c0_13, %c0_14], %17 {strides = array<i32>} : memref<8x128xf32, #tpu.memory_space<vmem>>, vector<8x128xf32>,
    %c0_i32_15 = arith.constant 0 : i32
    %19 = arith.cmpi eq, %arg1, %c0_i32_15 : i32
    %20 = arith.extui %19 : i1 to i32
    %c0_i32_16 = arith.constant 0 : i32
    %21 = arith.cmpi ne, %20, %c0_i32_16 : i32
    scf.if %21 {
      %c0_17 = arith.constant 0 : index
      %c0_18 = arith.constant 0 : index
      %22 = vector.load %arg6[%c0_17, %c0_18] : memref<8x128xf32, #tpu.memory_space<vmem>>, vector<8x128xf32>
      %23 = vector.shape_cast %22 : vector<8x128xf32> to vector<1x8x128xf32>
      %cst_19 = arith.constant dense<0.000000e+00> : vector<1xf32>
      %24 = vector.multi_reduction <add>, %23, %cst_19 [1, 2] : vector<1x8x128xf32> to vector<1xf32>
      %25 = vector.shape_cast %24 : vector<1xf32> to vector<1x1x1xf32>
      %26 = vector.extract %25[0, 0, 0] : f32 from vector<1x1x1xf32>
      %c0_20 = arith.constant 0 : index
      %c0_21 = arith.constant 0 : index
      %27 = memref.load %arg5[%c0_20, %c0_21] : memref<1x2xf32, #tpu.memory_space<smem>>
      memref.store %26, %arg5[%c0_20, %c0_21] : memref<1x2xf32, #tpu.memory_space<smem>>
      %c0_22 = arith.constant 0 : index
      %c0_23 = arith.constant 0 : index
      %28 = vector.load %arg7[%c0_22, %c0_23] : memref<8x128xf32, #tpu.memory_space<vmem>>, vector<8x128xf32>
      %29 = vector.shape_cast %28 : vector<8x128xf32> to vector<1x8x128xf32>
      %cst_24 = arith.constant dense<0.000000e+00> : vector<1xf32>
      %30 = vector.multi_reduction <add>, %29, %cst_24 [1, 2] : vector<1x8x128xf32> to vector<1xf32>
      %31 = vector.shape_cast %30 : vector<1xf32> to vector<1x1x1xf32>
      %32 = vector.extract %31[0, 0, 0] : f32 from vector<1x1x1xf32>
      %c0_25 = arith.constant 0 : index
      %c1 = arith.constant 1 : index
      %33 = memref.load %arg5[%c0_25, %c1] : memref<1x2xf32, #tpu.memory_space<smem>>
      memref.store %32, %arg5[%c0_25, %c1] : memref<1x2xf32, #tpu.memory_space<smem>>
    } else {
    }
    return
  }
  func.func @transform_0(%arg0: i32, %arg1: i32) -> (i32, i32) {
    %c1_i32 = arith.constant 1 : i32
    %0 = arith.muli %arg1, %c1_i32 : i32
    %1 = arith.addi %0, %arg0 : i32
    %c0_i32 = arith.constant 0 : i32
    %c0_i32_0 = arith.constant 0 : i32
    return %1, %c0_i32 : i32, i32
  }
  func.func @transform_1(%arg0: i32, %arg1: i32) -> (i32, i32) {
    %c1_i32 = arith.constant 1 : i32
    %0 = arith.muli %arg1, %c1_i32 : i32
    %1 = arith.addi %0, %arg0 : i32
    %c0_i32 = arith.constant 0 : i32
    %c0_i32_0 = arith.constant 0 : i32
    return %1, %c0_i32 : i32, i32
  }
  func.func @transform_2(%arg0: i32, %arg1: i32) -> (i32, i32) {
    %c1_i32 = arith.constant 1 : i32
    %0 = arith.muli %arg1, %c1_i32 : i32
    %1 = arith.addi %0, %arg0 : i32
    %c0_i32 = arith.constant 0 : i32
    %c0_i32_0 = arith.constant 0 : i32
    return %1, %c0_i32 : i32, i32
  }
  func.func @transform_3(%arg0: i32, %arg1: i32) -> (i32, i32) {
    %c0_i32 = arith.constant 0 : i32
    %c0_i32_0 = arith.constant 0 : i32
    return %arg0, %c0_i32 : i32, i32
  }
}

</mosaic_0001>

<bundles_post_ra>
// kernel: tpu_custom_call.1
= control target key start
LH: loop header
LB: loop body
LE: loop exit
PB: predicated region body
PF: predicated region fallthrough
CT: control target
= control target key end

     0   :  { %8 = vsyncpa [#allocation5], 0  ;;  %s288_s0 = inlined_call_operand.hbm [shape: f32[16,128], index: 0, kind: input, shape index: {}]   ;;  %s289_s1 = inlined_call_operand.hbm [shape: f32[16,128], index: 1, kind: input, shape index: {}]   ;;  %s290_s2 = inlined_call_operand.hbm [shape: f32[16,128], index: 2, kind: input, shape index: {}]   ;;  %s291_s3 = inlined_call_operand.hbm [shape: f32[1,2], index: 3, kind: output, shape index: {}]  }
   0x1   :  { %9 = vsyncpa [#allocation8], 0 }
   0x2   :  { %10 = vsyncpa [#allocation6], 0  ;;  %s36_s14 = sshll.u32 %s289_s1, 4  ;;  %s250_s15 = smov [#allocation7]   ;;  %s37_s14 = int_to_ptr.hbm [resolvable:$true] %s36_s14 }
   0x3   :  { %s38_s16 = sshll.u32 %s250_s15, 4  ;;  %s19_s19 = sshll.u32 %s288_s0, 4  ;;  %s39_s16 = int_to_ptr.vmem [resolvable:$true] %s38_s16  ;;  %s20_s19 = int_to_ptr.hbm [resolvable:$true] %s19_s19 }
   0x4   :  { %s251_s20 = smov 128   ;;  %s252_s21 = smov 8  }
   0x5   :  { %44 = dma.hbm_to_vmem [thread:$0]  %s37_s14, 256, %s39_s16, [#allocation8], %s251_s20, %s251_s20, %s252_s21  }
   0x6   :  { %s253_s22 = smov [#allocation4]   ;;  %s53_s26 = sshll.u32 %s290_s2, 4  ;;  %s54_s26 = int_to_ptr.hbm [resolvable:$true] %s53_s26 }
   0x7   :  { %s21_s23 = sshll.u32 %s253_s22, 4  ;;  %s254_s1 = smov [#allocation9]   ;;  %s22_s23 = int_to_ptr.vmem [resolvable:$true] %s21_s23 }
   0x8   :  { %27 = dma.hbm_to_vmem [thread:$0]  %s20_s19, 256, %s22_s23, [#allocation5], %s251_s20, %s251_s20, %s252_s21  }
   0x9   :  { %s55_s27 = sshll.u32 %s254_s1, 4  ;;  %s56_s27 = int_to_ptr.vmem [resolvable:$true] %s55_s27 }
   0xa   :  { %61 = dma.hbm_to_vmem [thread:$0]  %s54_s26, 256, %s56_s27, [#allocation8], %s251_s20, %s251_s20, %s252_s21  }
   0xb   :  { %244 = dma.done.wait [#allocation5], 256  }
   0xc   :  { %245 = vsyncadd [#allocation5], 4294967040 }
   0xd   :  { %246 = dma.done.wait [#allocation8], 512  }
   0xe   :  { %247 = vsyncadd [#allocation8], 4294966784  ;;  %v86_v0 = vld [vmem:[#allocation4] sm:$0xff]  ;;  %v87_v1 = vld [vmem:[#allocation4 + $0x8] sm:$0xff]  ;;  %s138_s29 = sshll.u32 %s291_s3, 4  ;;  %s255_s4 = smov [#allocation10]   ;;  %s139_s29 = int_to_ptr.hbm [resolvable:$true] %s138_s29 }
   0xf   :  { %v88_v2 = vld [vmem:[#allocation7] sm:$0xff]  ;;  %v89_v3 = vld [vmem:[#allocation7 + $0x8] sm:$0xff]  ;;  %v90_v4 = vld [vmem:[#allocation9] sm:$0xff] }
  0x10   :  { %v91_v5 = vld [vmem:[#allocation9 + $0x8] sm:$0xff]  ;;  %v92_v6 = vsub.f32 %v86_v0, %v88_v2  ;;  %v93_v7 = vsub.f32 %v87_v1, %v89_v3 }
  0x11   :  { %v103_v13 = vadd.f32 %v91_v5, %v90_v4 }
  0x12   :  { %v94_v8 = vmul.f32 %v92_v6, %v90_v4  ;;  %v95_v9 = vmul.f32 %v93_v7, %v91_v5 }
  0x14   :  { %v96_v10 = vmul.f32 %v94_v8, %v94_v8  ;;  %v97_v11 = vmul.f32 %v95_v9, %v95_v9 }
  0x16   :  { %v99_v12 = vadd.f32 %v97_v11, %v96_v10 }
  0x18   :  { %110 = vadd.xlane.f32.xlu0 %v99_v12 }
  0x20   :  { %122 = vadd.xlane.f32.xlu0 %v103_v13 }
  0x8b   :  { %v111_v14 = vpop.xlane.xlu0 %110 }
  0x8c   :  { %v112_v15 = vrot.slane %v111_v14, 4 }
  0x8e   :  { %v113_v16 = vadd.f32 %v112_v15, %v111_v14 }
  0x90   :  { %v114_v17 = vrot.slane %v113_v16, 2 }
  0x92   :  { %v115_v18 = vadd.f32 %v114_v17, %v113_v16 }
  0x93   :  { %v123_v19 = vpop.xlane.xlu0 %122 }
  0x94   :  { %v124_v20 = vrot.slane %v123_v19, 4  ;;  %v116_v21 = vrot.slane %v115_v18, 1 }
  0x96   :  { %v125_v22 = vadd.f32 %v124_v20, %v123_v19  ;;  %v117_v23 = vadd.f32 %v116_v21, %v115_v18 }
  0x98   :  { %v126_v24 = vrot.slane %v125_v22, 2  ;;  %150 = vpush %v117_v23 }
  0x9a   :  { %v127_v25 = vadd.f32 %v126_v24, %v125_v22 }
  0x9c   :  { %v128_v26 = vrot.slane %v127_v25, 1 }
  0x9e   :  { %v129_v27 = vadd.f32 %v128_v26, %v127_v25 }
  0xa0   :  { %152 = vpush %v129_v27 }
  0xc9   :  { %s151_s0 = spop %150 }
  0xca   :  { %120 = sst [smem:[#allocation10]] %s151_s0 }
  0xd1   :  { %s153_s30 = spop %152 }
  0xd2   :  { %132 = sst [smem:[#allocation10 + $0x1]] %s153_s30 }
  0xd3   :  { %141 = dma.smem_to_hbm %s255_s4, 16, %s139_s29, [#allocation6]  }
  0xd4   :  { %248 = dma.done.wait [#allocation6], 16  }
  0xd5   :  { %249 = vsyncadd [#allocation6], 4294967280 }
  0xd6   :  { %146 = sfence }
  0xd7   :  { %147 = vsyncpa [#allocation5], 1 }
  0xd8   :  { %148 = vsyncpa [#allocation8], 1 }
  0xd9   :  { %149 = vsyncpa [#allocation6], 1 }

</bundles_post_ra>
